<compile_context>
chip_gen: v5e
topology: v5e:2x2
jax: 0.10.0
libtpu: 0.0.40
codegen_flags: <defaults>
</compile_context>

<pallas_src>
import numpy as np
import jax
import jax.numpy as jnp
from jax.experimental import pallas as pl
from jax.experimental.pallas import tpu as pltpu

# Wide lane-dim candidates (largest first).  128 is the minimum legal lane
# extent; wider slabs give longer contiguous DMA bursts.
_WIDE_LANE_CANDIDATES = (8192, 4096, 2048, 1024, 512, 256, 128)

_TARGET_BLOCK_BYTES = 6 * 1024 * 1024   # 4-8 MiB sweet spot per perf review.
_VMEM_LIMIT_BYTES = 40 * 1024 * 1024    # 4 buffers x 6 MiB = 24 MiB + headroom;
                                        # below v7x's 64 MiB physical VMEM.
_SMALL_FAST_PATH_BYTES = 1 * 1024 * 1024


def _copy_kernel(x_ref, o_ref):
    # Pure pass-through: load the VMEM tile and store it unchanged.
    o_ref[...] = x_ref[...]


def _sublane_multiple(itemsize: int) -> int:
    # Packed sublane multiple: 8 for 4-byte, 16 for 2-byte, 32 for 1-byte.
    return max(8, 32 // itemsize)


def _identity_copy_2d(x2: jax.Array) -> jax.Array:
    """Bandwidth-optimized identity copy of a lane-dense (rows, cols) view."""
    rows, cols = x2.shape
    itemsize = jnp.dtype(x2.dtype).itemsize
    sub = _sublane_multiple(itemsize)

    # Byte-budgeted block rows, rounded down to the packed sublane multiple.
    block_rows = (_TARGET_BLOCK_BYTES // (cols * itemsize)) // sub * sub
    block_rows = max(sub, block_rows)
    if block_rows >= rows:
        block_rows = rows  # full-extent block: always layout-legal.
    grid = (pl.cdiv(rows, block_rows),)

    return pl.pallas_call(
        _copy_kernel,
        out_shape=jax.ShapeDtypeStruct((rows, cols), x2.dtype),
        grid_spec=pltpu.PrefetchScalarGridSpec(
            num_scalar_prefetch=0,
            grid=grid,
            in_specs=[pl.BlockSpec((block_rows, cols), lambda i: (i, 0))],
            out_specs=pl.BlockSpec((block_rows, cols), lambda i: (i, 0)),
        ),
        # Row axis is embarrassingly parallel (neutral on v5e/v6e single-TC,
        # lets v7x's 2 TensorCores split the copy if profitable).
        compiler_params=pltpu.CompilerParams(
            dimension_semantics=("parallel",),
            vmem_limit_bytes=_VMEM_LIMIT_BYTES,
        ),
        # Advisory: 0 flops, pure bandwidth (one read + one write pass).
        cost_estimate=pl.CostEstimate(
            flops=0,
            transcendentals=0,
            bytes_accessed=2 * rows * cols * itemsize,
        ),
    )(x2)


class StackableModulePallas:
    """JAX/Pallas mirror of StackableModule (no parameters, no compute)."""

    def __init__(self, in_size: int, out_size: int):
        if in_size < 0 or out_size < 0:
            raise ValueError("In size and out size cannot be negative!")
        self.in_size = in_size
        self.out_size = out_size  # stored but unused — the reference forward is a no-op.

    def __call__(self, x: jax.Array, *, materialize: bool = True,
                 force_kernel: bool = False) -> jax.Array:
        if x.ndim == 2:
            assert x.shape[-1] == self.in_size, "feature dim must equal in_size"

        # Reference forward() is a no-op: callers that don't need a fresh
        # buffer skip everything.
        if not materialize:
            return x

        n = int(np.prod(x.shape)) if x.ndim else 1
        if n == 0:
            return x

        itemsize = jnp.dtype(x.dtype).itemsize
        total_bytes = n * itemsize

        # Widest lane extent (multiple of 128) that divides the element count.
        cols = next((c for c in _WIDE_LANE_CANDIDATES if n % c == 0), None)

        # No pad/slice round-trips for unaligned sizes, and no kernel launch
        # for tiny inputs — a plain XLA copy is strictly cheaper there.
        small = total_bytes < _SMALL_FAST_PATH_BYTES
        if cols is None or (small and not force_kernel):
            return jnp.copy(x)

        x2 = x.reshape(n // cols, cols)
        out = _identity_copy_2d(x2)
        return out.reshape(x.shape)


if __name__ == "__main__":
    # Small shapes consistent with the module's constructor arguments.
    batch, in_size, out_size = 8, 32, 32
    key = jax.random.PRNGKey(0)
    x = jax.random.normal(key, (batch, in_size), dtype=jnp.float32)
    x_np = np.asarray(jax.device_get(x))

    mod = StackableModulePallas(in_size, out_size)
    # force_kernel=True so the Pallas path is exercised even though this input
    # is below the small-size fast-path threshold.
    y = mod(x, force_kernel=True)
    jax.block_until_ready(y)

    # Forward is a no-op in the reference; our Pallas kernel is an exact
    # identity on x, returned in a fresh buffer.
    assert y.shape == x.shape and y.dtype == x.dtype
    assert np.array_equal(np.asarray(jax.device_get(y)), x_np)
    print("KERNEL_OK")
</pallas_src>

<mosaic_0001>
module attributes {stable_mosaic.version = 11 : i64} {
  func.func @_copy_kernel(%arg0: i32, %arg1: memref<1x256xf32, #tpu.memory_space<vmem>>, %arg2: memref<1x256xf32, #tpu.memory_space<vmem>>) attributes {dimension_semantics = [#tpu.dimension_semantics<parallel>], iteration_bounds = array<i64: 1>, scalar_prefetch = 0 : i64, scratch_operands = 0 : i64, tpu.core_type = #tpu.core_type<tc>, window_params = [{transform_indices = @transform_0, window_bounds = array<i64: 1, 256>}, {transform_indices = @transform_1, window_bounds = array<i64: 1, 256>}]} {
    %c0 = arith.constant 0 : index
    %c0_0 = arith.constant 0 : index
    %0 = vector.load %arg1[%c0, %c0_0] : memref<1x256xf32, #tpu.memory_space<vmem>>, vector<1x256xf32>
    %c0_1 = arith.constant 0 : index
    %c0_2 = arith.constant 0 : index
    %1 = vector.load %arg2[%c0_1, %c0_2] : memref<1x256xf32, #tpu.memory_space<vmem>>, vector<1x256xf32>
    tpu.vector_store %arg2[%c0_1, %c0_2], %0 {strides = array<i32>} : memref<1x256xf32, #tpu.memory_space<vmem>>, vector<1x256xf32>,
    return
  }
  func.func @transform_0(%arg0: i32) -> (i32, i32) {
    %c0_i32 = arith.constant 0 : i32
    %c0_i32_0 = arith.constant 0 : i32
    return %arg0, %c0_i32 : i32, i32
  }
  func.func @transform_1(%arg0: i32) -> (i32, i32) {
    %c0_i32 = arith.constant 0 : i32
    %c0_i32_0 = arith.constant 0 : i32
    return %arg0, %c0_i32 : i32, i32
  }
}

</mosaic_0001>

<bundles_post_ra>
// kernel: tpu_custom_call.1
= control target key start
LH: loop header
LB: loop body
LE: loop exit
PB: predicated region body
PF: predicated region fallthrough
CT: control target
= control target key end

     0   :  { %6 = vsyncpa [#allocation3], 0  ;;  %s118_s0 = inlined_call_operand.hbm [shape: f32[1,256], index: 0, kind: input, shape index: {}]   ;;  %s119_s1 = inlined_call_operand.hbm [shape: f32[1,256], index: 1, kind: output, shape index: {}]  }
   0x1   :  { %7 = vsyncpa [#allocation4], 0  ;;  %s13_s8 = sshll.u32 %s118_s0, 4  ;;  %s100_s9 = smov [#allocation2]   ;;  %s14_s8 = int_to_ptr.hbm [resolvable:$true] %s13_s8 }
   0x2   :  { %s15_s10 = sshll.u32 %s100_s9, 4  ;;  %s16_s10 = int_to_ptr.vmem [resolvable:$true] %s15_s10 }
   0x3   :  { %18 = dma.hbm_to_vmem [thread:$0]  %s14_s8, 32, %s16_s10, [#allocation3]  }
   0x4   :  { %96 = dma.done.wait [#allocation3], 32  }
   0x5   :  { %97 = vsyncadd [#allocation3], 4294967264  ;;  %v24_v0 = vlaneseq  ;;  %s101_s11 = smov [#allocation5]   ;;  %s36_s15 = sshll.u32 %s119_s1, 4  ;;  %v23_v1 = vld [vmem:[#allocation2] sm:$0x3]  ;;  %s37_s15 = int_to_ptr.hbm [resolvable:$true] %s36_s15 }
   0x6   :  { %s34_s12 = sshll.u32 %s101_s11, 4  ;;  %s35_s12 = int_to_ptr.vmem [resolvable:$true] %s34_s12 }
   0x7   :  { %vm26_vm0 = vcmp.lt.s32.totalorder %v24_v0, 256 }
   0x8   :  { %28 = vst.msk [vmem:[#allocation5] sm:$0x3] %vm26_vm0, %v23_v1 }
   0x9   :  { %39 = dma.vmem_to_hbm [thread:$0]  %s35_s12, 32, %s37_s15, [#allocation4]  }
   0xa   :  { %98 = dma.done.wait [#allocation4], 32  }
   0xb   :  { %99 = vsyncadd [#allocation4], 4294967264 }
   0xc   :  { %44 = vsyncpa [#allocation3], 1 }
   0xd   :  { %45 = vsyncpa [#allocation4], 1 }

</bundles_post_ra>
